<compile_context>
chip_gen: v7x
topology: tpu7x:2x2x1
jax: 0.10.0
libtpu: 0.0.40
codegen_flags: <defaults>
</compile_context>

<pallas_src>
import jax
import jax.numpy as jnp
from jax.experimental import pallas as pl
from jax.experimental.pallas import tpu as pltpu

_TARGET_TILE_M = 16384   # rows of B*S per grid step (large-M target)


def _round_up(x, m):
    return ((x + m - 1) // m) * m


def _choose_tiling(M):
    """Balanced, 256-aligned tiles; >=2 (even) steps for large M (v7x megacore)."""
    if M <= 512:
        # Single exact block: block dims equal the full array dims, so the
        # (8, 128) divisibility rule never applies and there is no padding.
        return M, 1
    num_tiles = max(2, pl.cdiv(M, _TARGET_TILE_M))
    if num_tiles % 2:
        num_tiles += 1            # even step count: no lone-TC tail step on v7x
    tile_m = _round_up(pl.cdiv(M, num_tiles), 256)
    num_tiles = pl.cdiv(M, tile_m)
    return tile_m, num_tiles


def _cmle_kernel(x_ref,
                 w1_ref, b1_ref,
                 w2_ref, b2_ref,
                 w3_ref, b3_ref,
                 w4_ref, b4_ref,
                 o_ref):
    """relu(W4 . relu(W3 . relu(W2 . relu(W1 . x^T + b1) + b2) + b3) + b4), feature-major."""
    # x tile arrives in natural (Tm, F) f32 layout; cast to bf16 for the MXU.
    x = x_ref[...].astype(jnp.bfloat16)                                # (Tm, F)

    # Layer 1 as an NT matmul: contract w1's and x's last dims -> (4F, Tm).
    # This flips the dataflow to feature-major (M on lanes) with no explicit
    # transpose op; it is the same dot_general pattern as flash-attn q.k^T.
    h = jax.lax.dot_general(
        w1_ref[...], x,
        dimension_numbers=(((1,), (1,)), ((), ())),
        preferred_element_type=jnp.float32)                            # (4F, Tm) f32
    h = jnp.maximum(h + b1_ref[...], 0.0).astype(jnp.bfloat16)

    h = jnp.dot(w2_ref[...], h, preferred_element_type=jnp.float32)    # (2F, Tm) f32
    h = jnp.maximum(h + b2_ref[...], 0.0).astype(jnp.bfloat16)

    h = jnp.dot(w3_ref[...], h, preferred_element_type=jnp.float32)    # (F//2, Tm) f32
    h = jnp.maximum(h + b3_ref[...], 0.0)                              # keep f32

    # Last layer (F//2 -> 1): weighted sublane reduction on VPU/XLU; an MXU
    # matmul here would waste a push/drain on a K=16, M=1 product.
    h4 = jnp.sum(h * w4_ref[...], axis=0, keepdims=True) + b4_ref[...]  # (1, Tm) f32
    o_ref[...] = jnp.maximum(h4, 0.0)


@jax.jit
def cmle_forward(x, params):
    """x: (B, S, n_features) float32. Returns (B, S) float32."""
    B, S, F = x.shape
    M = B * S
    tile_m, num_tiles = _choose_tiling(M)

    (w1, b1), (w2, b2), (w3, b3), (w4, b4) = params

    # Collapsing leading dims is layout-free; no transpose / cast / pad pass.
    x2 = x.reshape(M, F)

    # Weights/biases: full-array blocks with constant index maps -> resident in
    # VMEM across all grid steps (no per-step re-DMA).
    resident = lambda a: pl.BlockSpec(a.shape, lambda i: (0, 0))

    flops = 2 * M * (F * (4 * F) + (4 * F) * (2 * F) + (2 * F) * (F // 2) + (F // 2))
    param_bytes = sum(int(a.size) * int(a.dtype.itemsize)
                      for pair in params for a in pair)
    bytes_accessed = 4 * M * F + 4 * M + param_bytes

    out = pl.pallas_call(
        _cmle_kernel,
        out_shape=jax.ShapeDtypeStruct((1, M), jnp.float32),
        grid=(num_tiles,),
        in_specs=[
            pl.BlockSpec((tile_m, F), lambda i: (i, 0)),   # x tile, pipelined
            resident(w1), resident(b1),
            resident(w2), resident(b2),
            resident(w3), resident(b3),
            resident(w4), resident(b4),
        ],
        out_specs=pl.BlockSpec((1, tile_m), lambda i: (0, i)),   # lane-dense strip
        compiler_params=pltpu.CompilerParams(
            dimension_semantics=("parallel",),
            vmem_limit_bytes=48 * 1024 * 1024,
        ),
        cost_estimate=pl.CostEstimate(
            flops=flops, transcendentals=0, bytes_accessed=bytes_accessed),
    )(x2, w1, b1, w2, b2, w3, b3, w4, b4)

    # PyTorch: result.view(result.shape[0], result.shape[1]) drops the trailing
    # singleton feature dim -> (B, S).
    return out[0].reshape(B, S)


def init_cmle_params(key, n_features):
    """weights_init: W ~ N(0, 0.5), b = 0.05.

    W1..W3 stay in PyTorch (out, in) orientation, cast to bf16 (MXU operands).
    W4 is stored as an (in, 1) f32 column (it feeds a VPU reduction).
    Biases are (out, 1) f32 columns so they broadcast along the lane (M) axis.
    """
    dims = [
        (n_features, n_features * 4),
        (n_features * 4, n_features * 2),
        (n_features * 2, n_features // 2),
        (n_features // 2, 1),
    ]
    params = []
    for li, (fan_in, fan_out) in enumerate(dims):
        key, sub = jax.random.split(key)
        w_pt = 0.5 * jax.random.normal(sub, (fan_out, fan_in), dtype=jnp.float32)
        b = jnp.full((fan_out, 1), 0.05, dtype=jnp.float32)
        if li == len(dims) - 1:
            w = jnp.transpose(w_pt)              # (fan_in, 1) f32 for VPU reduce
        else:
            w = w_pt.astype(jnp.bfloat16)        # (out, in) bf16 for MXU
        params.append((w, b))
    return tuple(params)


def cmle_reference(x, params):
    """Pure-JAX reference mirroring the kernel's bf16-operand / f32-accum path."""
    B, S, F = x.shape
    (w1, b1), (w2, b2), (w3, b3), (w4, b4) = params
    h = x.reshape(B * S, F).astype(jnp.bfloat16)
    h = jnp.maximum(jnp.dot(h, w1.T, preferred_element_type=jnp.float32) + b1.T, 0.0)
    h = jnp.maximum(jnp.dot(h.astype(jnp.bfloat16), w2.T,
                            preferred_element_type=jnp.float32) + b2.T, 0.0)
    h = jnp.maximum(jnp.dot(h.astype(jnp.bfloat16), w3.T,
                            preferred_element_type=jnp.float32) + b3.T, 0.0)
    h = jnp.maximum(jnp.dot(h, w4) + b4.T, 0.0)      # (M, 1) f32
    return h.reshape(B, S)


if __name__ == "__main__":
    n_features = 32   # -> hidden dims 128, 64, 16, 1
    B, S = 2, 8       # x: (batch, seq, n_features); result: (batch, seq)

    key = jax.random.PRNGKey(0)
    key, xkey = jax.random.split(key)
    x = jax.random.normal(xkey, (B, S, n_features), dtype=jnp.float32)

    params = init_cmle_params(key, n_features)

    out = cmle_forward(x, params)
    out = jax.block_until_ready(out)

    ref = cmle_reference(x, params)
    assert out.shape == (B, S), out.shape
    assert jnp.allclose(out, ref, atol=2e-2, rtol=2e-2), "mismatch vs reference"

    print("KERNEL_OK")
</pallas_src>

<mosaic_0001>
module attributes {stable_mosaic.version = 11 : i64} {
  func.func @_cmle_kernel(%arg0: i32, %arg1: memref<16x32xf32, #tpu.memory_space<vmem>>, %arg2: memref<128x32xbf16, #tpu.memory_space<vmem>>, %arg3: memref<128x1xf32, #tpu.memory_space<vmem>>, %arg4: memref<64x128xbf16, #tpu.memory_space<vmem>>, %arg5: memref<64x1xf32, #tpu.memory_space<vmem>>, %arg6: memref<16x64xbf16, #tpu.memory_space<vmem>>, %arg7: memref<16x1xf32, #tpu.memory_space<vmem>>, %arg8: memref<16x1xf32, #tpu.memory_space<vmem>>, %arg9: memref<1x1xf32, #tpu.memory_space<vmem>>, %arg10: memref<1x16xf32, #tpu.memory_space<vmem>>) attributes {dimension_semantics = [#tpu.dimension_semantics<parallel>], iteration_bounds = array<i64: 1>, scalar_prefetch = 0 : i64, scratch_operands = 0 : i64, tpu.core_type = #tpu.core_type<tc>, window_params = [{transform_indices = @transform_0, window_bounds = array<i64: 16, 32>}, {pipeline_mode = #tpu.pipeline_mode<synchronous>, transform_indices = @transform_1, window_bounds = array<i64: 128, 32>}, {pipeline_mode = #tpu.pipeline_mode<synchronous>, transform_indices = @transform_2, window_bounds = array<i64: 128, 1>}, {pipeline_mode = #tpu.pipeline_mode<synchronous>, transform_indices = @transform_3, window_bounds = array<i64: 64, 128>}, {pipeline_mode = #tpu.pipeline_mode<synchronous>, transform_indices = @transform_4, window_bounds = array<i64: 64, 1>}, {pipeline_mode = #tpu.pipeline_mode<synchronous>, transform_indices = @transform_5, window_bounds = array<i64: 16, 64>}, {pipeline_mode = #tpu.pipeline_mode<synchronous>, transform_indices = @transform_6, window_bounds = array<i64: 16, 1>}, {pipeline_mode = #tpu.pipeline_mode<synchronous>, transform_indices = @transform_7, window_bounds = array<i64: 16, 1>}, {pipeline_mode = #tpu.pipeline_mode<synchronous>, transform_indices = @transform_8, window_bounds = array<i64: 1, 1>}, {transform_indices = @transform_9, window_bounds = array<i64: 1, 16>}]} {
    %c0 = arith.constant 0 : index
    %c0_0 = arith.constant 0 : index
    %0 = vector.load %arg1[%c0, %c0_0] : memref<16x32xf32, #tpu.memory_space<vmem>>, vector<16x32xf32>
    %1 = arith.truncf %0 : vector<16x32xf32> to vector<16x32xbf16>
    %c0_1 = arith.constant 0 : index
    %c0_2 = arith.constant 0 : index
    %2 = vector.load %arg2[%c0_1, %c0_2] : memref<128x32xbf16, #tpu.memory_space<vmem>>, vector<128x32xbf16>
    %cst = arith.constant dense<0.000000e+00> : vector<128x16xf32>
    %3 = tpu.matmul %2, %1, %cst {dimension_numbers = #tpu.dot_dimension_numbers<[1], [1], [0], [0], [0, 0, 1, 0], [], []>} : vector<128x32xbf16>, vector<16x32xbf16>, vector<128x16xf32> -> vector<128x16xf32>
    %c0_3 = arith.constant 0 : index
    %c0_4 = arith.constant 0 : index
    %4 = vector.load %arg3[%c0_3, %c0_4] : memref<128x1xf32, #tpu.memory_space<vmem>>, vector<128x1xf32>
    %5 = vector.broadcast %4 : vector<128x1xf32> to vector<128x16xf32>
    %6 = arith.addf %3, %5 : vector<128x16xf32>
    %cst_5 = arith.constant 0.000000e+00 : f32
    %7 = vector.broadcast %cst_5 : f32 to vector<128x16xf32>
    %8 = arith.maximumf %6, %7 : vector<128x16xf32>
    %9 = arith.truncf %8 : vector<128x16xf32> to vector<128x16xbf16>
    %c0_6 = arith.constant 0 : index
    %c0_7 = arith.constant 0 : index
    %10 = vector.load %arg4[%c0_6, %c0_7] : memref<64x128xbf16, #tpu.memory_space<vmem>>, vector<64x128xbf16>
    %cst_8 = arith.constant dense<0.000000e+00> : vector<64x16xf32>
    %11 = tpu.matmul %10, %9, %cst_8 {dimension_numbers = #tpu.dot_dimension_numbers<[1], [0], [0], [1], [0, 0, 1, 1], [], []>} : vector<64x128xbf16>, vector<128x16xbf16>, vector<64x16xf32> -> vector<64x16xf32>
    %c0_9 = arith.constant 0 : index
    %c0_10 = arith.constant 0 : index
    %12 = vector.load %arg5[%c0_9, %c0_10] : memref<64x1xf32, #tpu.memory_space<vmem>>, vector<64x1xf32>
    %13 = vector.broadcast %12 : vector<64x1xf32> to vector<64x16xf32>
    %14 = arith.addf %11, %13 : vector<64x16xf32>
    %cst_11 = arith.constant 0.000000e+00 : f32
    %15 = vector.broadcast %cst_11 : f32 to vector<64x16xf32>
    %16 = arith.maximumf %14, %15 : vector<64x16xf32>
    %17 = arith.truncf %16 : vector<64x16xf32> to vector<64x16xbf16>
    %c0_12 = arith.constant 0 : index
    %c0_13 = arith.constant 0 : index
    %18 = vector.load %arg6[%c0_12, %c0_13] : memref<16x64xbf16, #tpu.memory_space<vmem>>, vector<16x64xbf16>
    %cst_14 = arith.constant dense<0.000000e+00> : vector<16x16xf32>
    %19 = tpu.matmul %18, %17, %cst_14 {dimension_numbers = #tpu.dot_dimension_numbers<[1], [0], [0], [1], [0, 0, 1, 1], [], []>} : vector<16x64xbf16>, vector<64x16xbf16>, vector<16x16xf32> -> vector<16x16xf32>
    %c0_15 = arith.constant 0 : index
    %c0_16 = arith.constant 0 : index
    %20 = vector.load %arg7[%c0_15, %c0_16] : memref<16x1xf32, #tpu.memory_space<vmem>>, vector<16x1xf32>
    %21 = vector.broadcast %20 : vector<16x1xf32> to vector<16x16xf32>
    %22 = arith.addf %19, %21 : vector<16x16xf32>
    %cst_17 = arith.constant 0.000000e+00 : f32
    %23 = vector.broadcast %cst_17 : f32 to vector<16x16xf32>
    %24 = arith.maximumf %22, %23 : vector<16x16xf32>
    %c0_18 = arith.constant 0 : index
    %c0_19 = arith.constant 0 : index
    %25 = vector.load %arg8[%c0_18, %c0_19] : memref<16x1xf32, #tpu.memory_space<vmem>>, vector<16x1xf32>
    %26 = vector.broadcast %25 : vector<16x1xf32> to vector<16x16xf32>
    %27 = arith.mulf %24, %26 : vector<16x16xf32>
    %cst_20 = arith.constant dense<0.000000e+00> : vector<16xf32>
    %28 = vector.multi_reduction <add>, %27, %cst_20 [0] : vector<16x16xf32> to vector<16xf32>
    %29 = vector.shape_cast %28 : vector<16xf32> to vector<1x16xf32>
    %c0_21 = arith.constant 0 : index
    %c0_22 = arith.constant 0 : index
    %30 = vector.load %arg9[%c0_21, %c0_22] : memref<1x1xf32, #tpu.memory_space<vmem>>, vector<1x1xf32>
    %31 = vector.broadcast %30 : vector<1x1xf32> to vector<1x16xf32>
    %32 = arith.addf %29, %31 : vector<1x16xf32>
    %cst_23 = arith.constant 0.000000e+00 : f32
    %33 = vector.broadcast %cst_23 : f32 to vector<1x16xf32>
    %34 = arith.maximumf %32, %33 : vector<1x16xf32>
    %c0_24 = arith.constant 0 : index
    %c0_25 = arith.constant 0 : index
    %35 = vector.load %arg10[%c0_24, %c0_25] : memref<1x16xf32, #tpu.memory_space<vmem>>, vector<1x16xf32>
    tpu.vector_store %arg10[%c0_24, %c0_25], %34 {strides = array<i32>} : memref<1x16xf32, #tpu.memory_space<vmem>>, vector<1x16xf32>,
    return
  }
  func.func @transform_0(%arg0: i32) -> (i32, i32) {
    %c0_i32 = arith.constant 0 : i32
    %c0_i32_0 = arith.constant 0 : i32
    return %arg0, %c0_i32 : i32, i32
  }
  func.func @transform_1(%arg0: i32) -> (i32, i32) {
    %c0_i32 = arith.constant 0 : i32
    %c0_i32_0 = arith.constant 0 : i32
    %c0_i32_1 = arith.constant 0 : i32
    return %c0_i32, %c0_i32_0 : i32, i32
  }
  func.func @transform_2(%arg0: i32) -> (i32, i32) {
    %c0_i32 = arith.constant 0 : i32
    %c0_i32_0 = arith.constant 0 : i32
    %c0_i32_1 = arith.constant 0 : i32
    return %c0_i32, %c0_i32_0 : i32, i32
  }
  func.func @transform_3(%arg0: i32) -> (i32, i32) {
    %c0_i32 = arith.constant 0 : i32
    %c0_i32_0 = arith.constant 0 : i32
    %c0_i32_1 = arith.constant 0 : i32
    return %c0_i32, %c0_i32_0 : i32, i32
  }
  func.func @transform_4(%arg0: i32) -> (i32, i32) {
    %c0_i32 = arith.constant 0 : i32
    %c0_i32_0 = arith.constant 0 : i32
    %c0_i32_1 = arith.constant 0 : i32
    return %c0_i32, %c0_i32_0 : i32, i32
  }
  func.func @transform_5(%arg0: i32) -> (i32, i32) {
    %c0_i32 = arith.constant 0 : i32
    %c0_i32_0 = arith.constant 0 : i32
    %c0_i32_1 = arith.constant 0 : i32
    return %c0_i32, %c0_i32_0 : i32, i32
  }
  func.func @transform_6(%arg0: i32) -> (i32, i32) {
    %c0_i32 = arith.constant 0 : i32
    %c0_i32_0 = arith.constant 0 : i32
    %c0_i32_1 = arith.constant 0 : i32
    return %c0_i32, %c0_i32_0 : i32, i32
  }
  func.func @transform_7(%arg0: i32) -> (i32, i32) {
    %c0_i32 = arith.constant 0 : i32
    %c0_i32_0 = arith.constant 0 : i32
    %c0_i32_1 = arith.constant 0 : i32
    return %c0_i32, %c0_i32_0 : i32, i32
  }
  func.func @transform_8(%arg0: i32) -> (i32, i32) {
    %c0_i32 = arith.constant 0 : i32
    %c0_i32_0 = arith.constant 0 : i32
    %c0_i32_1 = arith.constant 0 : i32
    return %c0_i32, %c0_i32_0 : i32, i32
  }
  func.func @transform_9(%arg0: i32) -> (i32, i32) {
    %c0_i32 = arith.constant 0 : i32
    %c0_i32_0 = arith.constant 0 : i32
    return %c0_i32, %arg0 : i32, i32
  }
}

</mosaic_0001>

<bundles_post_ra>
// kernel: squeeze.1
= control target key start
LH: loop header
LB: loop body
LE: loop exit
PB: predicated region body
PF: predicated region fallthrough
CT: control target
= control target key end

     0   :  { %s85_s0 = inlined_call_operand.vmem [shape: f32[16], index: 0, kind: input, shape index: {}]   ;;  %s86_s1 = inlined_call_operand.hbm [shape: f32[2,8], index: 1, kind: output, shape index: {}]  }
   0x1   :  { %v5_v0 = vld [vmem:[%s85_s0] sm:$0x1] }
   0x2   :  { %2 = vsyncpa [#allocation1], 0  ;;  %6 = vst [vmem:[#allocation3] sm:$0x1] %v5_v0  ;;  %vm8_vm0 = vcmask 64512   ;;  %s58_s0 = smov 120  }
   0x3   :  { %s59_s8 = smov [#allocation0]  }
   0x4   :  { %s26_s9 = sshll.u32 %s59_s8, 4  ;;  %s27_s9 = int_to_ptr.vmem [resolvable:$true] %s26_s9 }
   0x5   :  { %s34_s10 = scalar_lea.vmem %s27_s9, 32  ;;  %p39_p1 = scmp.lt.s32.totalorder %s27_s9, %s27_s9 }
   0x6   :  { %p35_p0 = scmp.ne.s32.totalorder %s27_s9, %s34_s10  ;;  %p40_p2 = scmp.lt.s32.totalorder %s34_s10, %s34_s10 }
   0x8   :  { %p41_p3 = por %p40_p2, %p39_p1 }
   0x9   :  { %v10_v1 = vld [vmem:[#allocation3] sm:$0x1]  }
   0xa   :  { %v7_v2 = vld [vmem:[#allocation3] sm:$0x1]   ;;  %11 = vrot.lane.b32.xlu0 %v10_v1, %s58_s0  ;;  %p42_p4 = pnand %p41_p3, %p35_p0 }
   0xb   :  { %9 = vst.msk [vmem:[#allocation2] sm:$0x1] %vm8_vm0, %v7_v2  }
  0x7c   :  { %v12_v3 = vpop.permute.xlu0 %11  }
  0x7d   :  { %15 = vst.msk [vmem:[#allocation2 + $0x1] sm:$0x1] %vm8_vm0, %v12_v3  }
  0x84   :  { %v19_v4 = vld [vmem:[#allocation2] sm:$0x3] }
  0x85   :  { %21 = vst [vmem:[#allocation0] sm:$0x3] %v19_v4 }
  0x86   :  { %45 = shalt.err (!%p42_p4)
}
  0x87   :  { %s46_s13 = scalar_lea.hbm %s86_s1, 32 }
  0x88   :  { %p47_p5 = scmp.ne.s32.totalorder %s86_s1, %s46_s13  ;;  %p50_p6 = scmp.lt.u32.totalorder %s46_s13, %s86_s1 }
  0x8a   :  { %p52_p7 = pnand %p50_p6, %p47_p5 }
  0x8c   :  { %55 = shalt.err (!%p52_p7)
}
  0x8d   :  { %29 = dma.vmem_to_hbm [thread:$0]  %s27_s9, 32, %s86_s1, [#allocation1]  }
  0x8e   :  { %56 = dma.done.wait [#allocation1], 32  }
  0x8f   :  { %57 = vsyncadd [#allocation1], 4294967264 }
  0x90   :  { %31 = vsyncpa [#allocation1], 1 }

// kernel: cmle_forward.1
= control target key start
LH: loop header
LB: loop body
LE: loop exit
PB: predicated region body
PF: predicated region fallthrough
CT: control target
= control target key end

     0   :  { %vm190_vm0 = vcmask 261120   ;;  %v725_v2 = vmov 0   ;;  %vm727_vm1 = vmmov 0   ;;  %vm515_vm2 = vcmask 523264   ;;  %s923_s0 = inlined_call_operand.vmem [shape: f32[16,32], index: 0, kind: input, shape index: {}]   ;;  %s924_s1 = inlined_call_operand.vmem [shape: bf16[128,32], index: 1, kind: input, shape index: {}]   ;;  %s925_s8 = inlined_call_operand.<no memory space> [shape: f32[1,1], index: 8, kind: input, shape index: {}]   ;;  %s926_s2 = inlined_call_operand.vmem [shape: f32[128,1], index: 2, kind: input, shape index: {}]   ;;  %s927_s4 = inlined_call_operand.vmem [shape: f32[64,1], index: 4, kind: input, shape index: {}]   ;;  %s928_s6 = inlined_call_operand.vmem [shape: f32[16,1], index: 6, kind: input, shape index: {}]   ;;  %s929_s7 = inlined_call_operand.vmem [shape: f32[16,1], index: 7, kind: input, shape index: {}]   ;;  %s930_s3 = inlined_call_operand.vmem [shape: bf16[64,128], index: 3, kind: input, shape index: {}]   ;;  %s931_s5 = inlined_call_operand.vmem [shape: bf16[16,64], index: 5, kind: input, shape index: {}]   ;;  %s932_s9 = inlined_call_operand.vmem [shape: f32[1,16], index: 9, kind: output, shape index: {}]  }
   0x1   :  { %v35_v0 = vld [vmem:[%s923_s0] sm:$0xff]  ;;  %v36_v1 = vld [vmem:[%s923_s0 + $0x8] sm:$0xff]  ;;  %710 = vset.pattern.permute.xlu0 %v725_v2  ;;  %711 = vset.pattern.permute.xlu1 %v725_v2  ;;  %v14_v3 = vstv %s925_s8  ;;  %v714_v8 = vld [vmem:[%s924_s1 + $0x10] sm:$0xff]   ;;  %vm576_vm3 = vcmask 130048   ;;  %vm598_vm4 = vcmask 122880  }
   0x2   :  { %v37_v4 = vpack.c.bf16 %v36_v1, %v35_v0  ;;  %v712_v5 = vld [vmem:[%s924_s1] sm:$0xff]   ;;  %15 = vst [vmem:[#allocation2] sm:$0x1] %v14_v3  ;;  %v713_v7 = vld [vmem:[%s924_s1 + $0x8] sm:$0xff]   ;;  %v56_v10 = vld [vmem:[%s926_s2 + $0x10] sm:$0xff] }
   0x3   :  { %654 = vmatprep.mubr.msk.bf16.mxu0 %vm190_vm0, %v712_v5  ;;  %v54_v9 = vld [vmem:[%s926_s2] sm:$0xff]  ;;  %v55_v11 = vld [vmem:[%s926_s2 + $0x8] sm:$0xff]  ;;  %82 = vperm.xlu1 %711, %v56_v10   ;;  %v57_v12 = vld [vmem:[%s926_s2 + $0x18] sm:$0xff] }
   0x4   :  { %706 = vmatprep.subr.msk.bf16.mxu0 %vm190_vm0, %v37_v4  ;;  %v216_v6 = vsel %vm190_vm0, %v37_v4, 0  ;;  %72 = vperm.xlu0 %710, %v54_v9   ;;  %v58_v13 = vld [vmem:[%s926_s2 + $0x20] sm:$0xff]  ;;  %v715_v14 = vld [vmem:[%s924_s1 + $0x18] sm:$0xff]   ;;  %v59_v15 = vld [vmem:[%s926_s2 + $0x28] sm:$0xff] }
   0x5   :  { %653 = vmatpush3.bf16.xpose.msra.mxu0 %v216_v6  ;;  %v716_v16 = vld [vmem:[%s924_s1 + $0x20] sm:$0xff]   ;;  %v60_v17 = vld [vmem:[%s926_s2 + $0x30] sm:$0xff]  ;;  %v61_v18 = vld [vmem:[%s926_s2 + $0x38] sm:$0xff] }
   0x6   :  { %v62_v19 = vld [vmem:[%s926_s2 + $0x40] sm:$0xff]  ;;  %v717_v20 = vld [vmem:[%s924_s1 + $0x28] sm:$0xff]   ;;  %v718_v22 = vld [vmem:[%s924_s1 + $0x30] sm:$0xff]  }
   0x7   :  { %87 = vperm.xlu1 %711, %v57_v12   ;;  %v63_v21 = vld [vmem:[%s926_s2 + $0x48] sm:$0xff]  ;;  %v64_v23 = vld [vmem:[%s926_s2 + $0x50] sm:$0xff]  ;;  %v65_v24 = vld [vmem:[%s926_s2 + $0x58] sm:$0xff] }
   0x8   :  { %77 = vperm.xlu0 %710, %v55_v11   ;;  %v66_v25 = vld [vmem:[%s926_s2 + $0x60] sm:$0xff]  ;;  %v719_v26 = vld [vmem:[%s924_s1 + $0x38] sm:$0xff]   ;;  %v67_v27 = vld [vmem:[%s926_s2 + $0x68] sm:$0xff] }
   0x9   :  { %v68_v28 = vld [vmem:[%s926_s2 + $0x70] sm:$0xff]  ;;  %v69_v29 = vld [vmem:[%s926_s2 + $0x78] sm:$0xff]  ;;  %v347_v30 = vld [vmem:[%s927_s4] sm:$0xff] }
   0xa   :  { %v348_v31 = vld [vmem:[%s927_s4 + $0x8] sm:$0xff]  ;;  %v349_v32 = vld [vmem:[%s927_s4 + $0x10] sm:$0xff]  ;;  %v350_v33 = vld [vmem:[%s927_s4 + $0x18] sm:$0xff] }
   0xb   :  { %97 = vperm.xlu1 %711, %v59_v15   ;;  %v351_v34 = vld [vmem:[%s927_s4 + $0x20] sm:$0xff]  ;;  %v352_v35 = vld [vmem:[%s927_s4 + $0x28] sm:$0xff]  ;;  %v353_v36 = vld [vmem:[%s927_s4 + $0x30] sm:$0xff] }
   0xc   :  { %655 = vmatmul.mubr.msk.bf16.vlgmr.msra.gmra.mrb[0].mxu0 %vm190_vm0, %v713_v7  ;;  %92 = vperm.xlu0 %710, %v58_v13   ;;  %v354_v37 = vld [vmem:[%s927_s4 + $0x38] sm:$0xff]  ;;  %v498_v38 = vld [vmem:[%s928_s6] sm:$0xff]  ;;  %v499_v39 = vld [vmem:[%s928_s6 + $0x8] sm:$0xff] }
   0xd   :  { %658 = vmatprep.mubr.msk.bf16.mxu0 %vm190_vm0, %v714_v8  ;;  %v562_v40 = vld [vmem:[%s929_s7] sm:$0xff]  ;;  %v563_v41 = vld [vmem:[%s929_s7 + $0x8] sm:$0xff] }
   0xe   :  { %v586_v42 = vld [vmem:[#allocation2] sm:$0x1] }
   0xf   :  { %107 = vperm.xlu1 %711, %v61_v18   ;;  %v720_v43 = vld [vmem:[%s930_s3] sm:$0xff]  }
  0x10   :  { %102 = vperm.xlu0 %710, %v60_v17   ;;  %686 = vmatprep.mubr.bf16.mxu1 %v720_v43 }
  0x13   :  { %117 = vperm.xlu1 %711, %v63_v21  }
  0x14   :  { %659 = vmatmul.mubr.msk.bf16.gmra.mrb[4].mxu0 %vm190_vm0, %v715_v14  ;;  %112 = vperm.xlu0 %710, %v62_v19  }
  0x15   :  { %662 = vmatprep.mubr.msk.bf16.mxu0 %vm190_vm0, %v716_v16 }
  0x17   :  { %127 = vperm.xlu1 %711, %v65_v24  }
  0x18   :  { %122 = vperm.xlu0 %710, %v64_v23  }
  0x1b   :  { %137 = vperm.xlu1 %711, %v67_v27  }
  0x1c   :  { %663 = vmatmul.mubr.msk.bf16.gmra.mrb[8].mxu0 %vm190_vm0, %v717_v20  ;;  %132 = vperm.xlu0 %710, %v66_v25  }
  0x1d   :  { %666 = vmatprep.mubr.msk.bf16.mxu0 %vm190_vm0, %v718_v22 }
  0x1f   :  { %147 = vperm.xlu1 %711, %v69_v29  }
  0x20   :  { %142 = vperm.xlu0 %710, %v68_v28  }
  0x23   :  { %362 = vperm.xlu1 %711, %v348_v31  }
  0x24   :  { %667 = vmatmul.mubr.msk.bf16.gmra.mrb[12].mxu0 %vm190_vm0, %v719_v26  ;;  %357 = vperm.xlu0 %710, %v347_v30  }
  0x27   :  { %372 = vperm.xlu1 %711, %v350_v33  }
  0x28   :  { %367 = vperm.xlu0 %710, %v349_v32  }
  0x2b   :  { %382 = vperm.xlu1 %711, %v352_v35  }
  0x2c   :  { %377 = vperm.xlu0 %710, %v351_v34  }
  0x2f   :  { %392 = vperm.xlu1 %711, %v354_v37  }
  0x30   :  { %387 = vperm.xlu0 %710, %v353_v36  }
  0x33   :  { %507 = vperm.xlu1 %711, %v499_v39  }
  0x34   :  { %502 = vperm.xlu0 %710, %v498_v38  }
  0x37   :  { %571 = vperm.xlu1 %711, %v563_v41  }
  0x38   :  { %566 = vperm.xlu0 %710, %v562_v40  }
  0x3c   :  { %589 = vperm.xlu0 %710, %v586_v42  }
  0x82   :  { %v83_v45 = vpop.permute.xlu1 %82 }
  0x83   :  { %v73_v44 = vpop.permute.xlu0 %72 }
  0x86   :  { %v88_v47 = vpop.permute.xlu1 %87 }
  0x87   :  { %v78_v46 = vpop.permute.xlu0 %77 }
  0x8a   :  { %v98_v49 = vpop.permute.xlu1 %97 }
  0x8b   :  { %v93_v48 = vpop.permute.xlu0 %92 }
  0x8e   :  { %v108_v54 = vpop.permute.xlu1 %107 }
  0x8f   :  { %v103_v50 = vpop.permute.xlu0 %102 }
  0x92   :  { %v118_v2 = vpop.permute.xlu1 %117 }
  0x93   :  { %v113_v62 = vpop.permute.xlu0 %112 }
  0x96   :  { %v128_v15 = vpop.permute.xlu1 %127 }
  0x97   :  { %v123_v11 = vpop.permute.xlu0 %122 }
  0x9a   :  { %v138_v28 = vpop.permute.xlu1 %137 }
  0x9b   :  { %v133_v23 = vpop.permute.xlu0 %132 }
  0x9e   :  { %v148_v40 = vpop.permute.xlu1 %147 }
  0x9f   :  { %v143_v35 = vpop.permute.xlu0 %142 }
  0xdf   :  { %v656_v51 = vpop.f32.mrb[0].mxu0 }
  0xe0   :  { %v261_v52 = vadd.f32 %v656_v51, %v83_v45  ;;  %v252_v53 = vpop.f32.mrb[1].mxu0 }
  0xe1   :  { %v253_v55 = vadd.f32 %v252_v53, %v73_v44  ;;  %v657_v56 = vpop.f32.mrb[2].mxu0  ;;  %v722_v53 = vld [vmem:[%s930_s3 + $0x10] sm:$0xff]  }
  0xe2   :  { %v264_v57 = vadd.f32 %v657_v56, %v88_v47  ;;  %v255_v58 = vpop.f32.mrb[3].mxu0  ;;  %v317_v60 = vmax.f32 %v261_v52, 0.0  ;;  %v721_v52 = vld [vmem:[%s930_s3 + $0x8] sm:$0xff]   ;;  %v358_v56 = vpop.permute.xlu0 %357 }
  0xe3   :  { %v256_v59 = vadd.f32 %v255_v58, %v78_v46  ;;  %v315_v63 = vmax.f32 %v253_v55, 0.0  ;;  %v726_v55 = vmov 0.0  }
  0xe4   :  { %v318_v61 = vmax.f32 %v264_v57, 0.0  ;;  %694 = vmatprep.subr.bf16.mxu0 %v726_v55  ;;  %702 = vmatprep.mubr.msk.bf16.mxu0 %vm727_vm1, %v726_v55  ;;  %v363_v57 = vpop.permute.xlu1 %362 }
  0xe5   :  { %v316_v0 = vmax.f32 %v256_v59, 0.0 }
  0xe6   :  { %v332_v1 = vpack.c.bf16 %v318_v61, %v317_v60  ;;  %v368_v58 = vpop.permute.xlu0 %367 }
  0xe7   :  { %v660_v3 = vpop.f32.mrb[4].mxu0  ;;  %v331_v4 = vpack.c.bf16 %v316_v0, %v315_v63 }
  0xe8   :  { %v277_v5 = vadd.f32 %v660_v3, %v103_v50  ;;  %v268_v6 = vpop.f32.mrb[5].mxu0  ;;  %v373_v59 = vpop.permute.xlu1 %372 }
  0xe9   :  { %v269_v7 = vadd.f32 %v268_v6, %v93_v48  ;;  %v661_v8 = vpop.f32.mrb[6].mxu0  ;;  %670 = vmatprep.subr.bf16.mxu1 %v331_v4 }
  0xea   :  { %v280_v9 = vadd.f32 %v661_v8, %v108_v54  ;;  %v271_v10 = vpop.f32.mrb[7].mxu0  ;;  %671 = vmatpush3.bf16.msra.mxu1 %v331_v4  ;;  %v321_v13 = vmax.f32 %v277_v5, 0.0  ;;  %v723_v54 = vld [vmem:[%s930_s3 + $0x18] sm:$0xff]   ;;  %v378_v63 = vpop.permute.xlu0 %377 }
  0xeb   :  { %v272_v12 = vadd.f32 %v271_v10, %v98_v49  ;;  %672 = vmatprep.subr.bf16.mxu1 %v332_v1  ;;  %v319_v16 = vmax.f32 %v269_v7, 0.0 }
  0xec   :  { %v322_v14 = vmax.f32 %v280_v9, 0.0  ;;  %v383_v4 = vpop.permute.xlu1 %382 }
  0xed   :  { %v320_v17 = vmax.f32 %v272_v12, 0.0 }
  0xee   :  { %v334_v18 = vpack.c.bf16 %v322_v14, %v321_v13  ;;  %673 = vmatpush3.bf16.msra.mxu1 %v332_v1 }
  0xef   :  { %v333_v19 = vpack.c.bf16 %v320_v17, %v319_v16  ;;  %v664_v20 = vpop.f32.mrb[8].mxu0 }
  0xf0   :  { %v293_v21 = vadd.f32 %v664_v20, %v123_v11  ;;  %v284_v22 = vpop.f32.mrb[9].mxu0  ;;  %v388_v11 = vpop.permute.xlu0 %387 }
  0xf1   :  { %v285_v24 = vadd.f32 %v284_v22, %v113_v62  ;;  %v665_v25 = vpop.f32.mrb[10].mxu0  ;;  %674 = vmatprep.subr.bf16.mxu1 %v333_v19  ;;  %v393_v16 = vpop.permute.xlu1 %392 }
  0xf2   :  { %v296_v26 = vadd.f32 %v665_v25, %v128_v15  ;;  %v287_v27 = vpop.f32.mrb[11].mxu0  ;;  %675 = vmatpush3.bf16.msra.mxu1 %v333_v19  ;;  %v325_v30 = vmax.f32 %v293_v21, 0.0 }
  0xf3   :  { %v288_v29 = vadd.f32 %v287_v27, %v118_v2  ;;  %676 = vmatprep.subr.bf16.mxu1 %v334_v18  ;;  %v323_v32 = vmax.f32 %v285_v24, 0.0 }
  0xf4   :  { %v326_v31 = vmax.f32 %v296_v26, 0.0 }
  0xf5   :  { %v324_v33 = vmax.f32 %v288_v29, 0.0  ;;  %v503_v29 = vpop.permute.xlu0 %502 }
  0xf6   :  { %v336_v34 = vpack.c.bf16 %v326_v31, %v325_v30  ;;  %677 = vmatpush3.bf16.msra.mxu1 %v334_v18  ;;  %v508_v30 = vpop.permute.xlu1 %507 }
  0xf7   :  { %v335_v36 = vpack.c.bf16 %v324_v33, %v323_v32  ;;  %v668_v37 = vpop.f32.mrb[12].mxu0 }
  0xf8   :  { %v309_v38 = vadd.f32 %v668_v37, %v143_v35  ;;  %v300_v39 = vpop.f32.mrb[13].mxu0 }
  0xf9   :  { %v301_v41 = vadd.f32 %v300_v39, %v133_v23  ;;  %v669_v42 = vpop.f32.mrb[14].mxu0  ;;  %678 = vmatprep.subr.bf16.mxu1 %v335_v36 }
  0xfa   :  { %v312_v43 = vadd.f32 %v669_v42, %v148_v40  ;;  %v303_v44 = vpop.f32.mrb[15].mxu0  ;;  %679 = vmatpush3.bf16.msra.mxu1 %v335_v36  ;;  %v329_v46 = vmax.f32 %v309_v38, 0.0  ;;  %v567_v38 = vpop.permute.xlu0 %566 }
  0xfb   :  { %v304_v45 = vadd.f32 %v303_v44, %v138_v28  ;;  %680 = vmatprep.subr.bf16.mxu1 %v336_v34  ;;  %v327_v48 = vmax.f32 %v301_v41, 0.0  ;;  %v724_v28 = vld [vmem:[%s931_s5] sm:$0xff]   ;;  %v572_v41 = vpop.permute.xlu1 %571 }
  0xfc   :  { %v330_v47 = vmax.f32 %v312_v43, 0.0 }
  0xfd   :  { %v328_v49 = vmax.f32 %v304_v45, 0.0  ;;  %v592_v45 = vlaneseq }
  0xfe   :  { %v338_v50 = vpack.c.bf16 %v330_v47, %v329_v46  ;;  %681 = vmatpush3.bf16.msra.mxu1 %v336_v34 }
  0xff   :  { %v337_v51 = vpack.c.bf16 %v328_v49, %v327_v48  ;;  %v593_v48 = vshrl.u32 %v592_v45, 7 }
 0x101   :  { %682 = vmatprep.subr.bf16.mxu1 %v337_v51 }
 0x102   :  { %683 = vmatpush3.bf16.msra.mxu1 %v337_v51  ;;  %v594_v51 = vsub.s32 0, %v593_v48 }
 0x103   :  { %684 = vmatprep.subr.bf16.mxu1 %v338_v50 }
 0x106   :  { %685 = vmatpush3.bf16.msra.mxu1 %v338_v50 }
 0x109   :  { %687 = vmatmul.mubr.bf16.vlgmr.msra.gmra.mrb[0].mxu1 %v721_v52 }
 0x10a   :  { %690 = vmatprep.mubr.bf16.mxu1 %v722_v53  ;;  %v590_v53 = vpop.permute.xlu0 %589 }
 0x111   :  { %691 = vmatmul.mubr.bf16.gmra.mrb[4].mxu1 %v723_v54 }
 0x1dc   :  { %v688_v60 = vpop.f32.mrb[0].mxu1 }
 0x1dd   :  { %v462_v61 = vadd.f32 %v688_v60, %v368_v58  ;;  %v453_v62 = vpop.f32.mrb[1].mxu1 }
 0x1de   :  { %v454_v0 = vadd.f32 %v453_v62, %v358_v56  ;;  %v689_v1 = vpop.f32.mrb[2].mxu1 }
 0x1df   :  { %v465_v2 = vadd.f32 %v689_v1, %v373_v59  ;;  %v456_v3 = vpop.f32.mrb[3].mxu1  ;;  %v486_v6 = vmax.f32 %v462_v61, 0.0 }
 0x1e0   :  { %v457_v5 = vadd.f32 %v456_v3, %v363_v57  ;;  %v484_v8 = vmax.f32 %v454_v0, 0.0 }
 0x1e1   :  { %v487_v7 = vmax.f32 %v465_v2, 0.0 }
 0x1e2   :  { %v485_v9 = vmax.f32 %v457_v5, 0.0 }
 0x1e3   :  { %v493_v10 = vpack.c.bf16 %v487_v7, %v486_v6 }
 0x1e4   :  { %v492_v12 = vpack.c.bf16 %v485_v9, %v484_v8  ;;  %v692_v13 = vpop.f32.mrb[4].mxu1 }
 0x1e5   :  { %v478_v14 = vadd.f32 %v692_v13, %v388_v11  ;;  %v469_v15 = vpop.f32.mrb[5].mxu1 }
 0x1e6   :  { %v470_v17 = vadd.f32 %v469_v15, %v378_v63  ;;  %v693_v18 = vpop.f32.mrb[6].mxu1  ;;  %695 = vmatpush3.bf16.msra.mxu0 %v492_v12 }
 0x1e7   :  { %v481_v19 = vadd.f32 %v693_v18, %v393_v16  ;;  %v472_v20 = vpop.f32.mrb[7].mxu1  ;;  %696 = vmatprep.subr.bf16.mxu0 %v726_v55  ;;  %v490_v22 = vmax.f32 %v478_v14, 0.0 }
 0x1e8   :  { %v473_v21 = vadd.f32 %v472_v20, %v383_v4  ;;  %v488_v24 = vmax.f32 %v470_v17, 0.0 }
 0x1e9   :  { %v491_v23 = vmax.f32 %v481_v19, 0.0 }
 0x1ea   :  { %v489_v25 = vmax.f32 %v473_v21, 0.0  ;;  %697 = vmatpush3.bf16.msra.mxu0 %v493_v10 }
 0x1eb   :  { %v495_v26 = vpack.c.bf16 %v491_v23, %v490_v22  ;;  %698 = vmatprep.subr.bf16.mxu0 %v726_v55 }
 0x1ec   :  { %v494_v27 = vpack.c.bf16 %v489_v25, %v488_v24 }
 0x1ee   :  { %699 = vmatpush3.bf16.msra.mxu0 %v494_v27 }
 0x1ef   :  { %700 = vmatprep.subr.bf16.mxu0 %v726_v55  ;;  %v595_v55 = vrot.slane %v590_v53, %v594_v51 }
 0x1f2   :  { %701 = vmatpush3.bf16.msra.mxu0 %v495_v26 }
 0x1f5   :  { %703 = vmatmul.mubr.msk.bf16.vlgmr.msra.gmra.mrb[16].mxu0 %vm515_vm2, %v724_v28 }
 0x2c8   :  { %v553_v31 = vpop.f32.mrb[16].mxu0 }
 0x2c9   :  { %v554_v32 = vadd.f32 %v553_v31, %v503_v29  ;;  %v704_v33 = vpop.f32.mrb[17].mxu0 }
 0x2ca   :  { %v556_v34 = vpop.f32.mrb[18].mxu0 }
 0x2cb   :  { %v560_v35 = vmax.f32 %v554_v32, 0.0  ;;  %v557_v36 = vadd.f32 %v556_v34, %v508_v30  ;;  %v705_v37 = vpop.f32.mrb[19].mxu0 }
 0x2cd   :  { %v574_v39 = vmul.f32 %v567_v38, %v560_v35  ;;  %v561_v40 = vmax.f32 %v557_v36, 0.0 }
 0x2cf   :  { %v575_v42 = vmul.f32 %v572_v41, %v561_v40  ;;  %v577_v43 = vsel %vm576_vm3, %v574_v39, 0.0 }
 0x2d1   :  { %v578_v44 = vsel %vm576_vm3, %v575_v42, 0.0 }
 0x2d2   :  { %v579_v46 = vadd.f32 %v578_v44, %v577_v43 }
 0x2d4   :  { %v580_v47 = vrot.slane %v579_v46, 4 }
 0x2d6   :  { %v581_v49 = vadd.f32 %v580_v47, %v579_v46 }
 0x2d8   :  { %v582_v50 = vrot.slane %v581_v49, 2 }
 0x2da   :  { %v583_v52 = vadd.f32 %v582_v50, %v581_v49 }
 0x2dc   :  { %v584_v54 = vrot.slane %v583_v52, 1 }
 0x2de   :  { %v585_v56 = vadd.f32 %v584_v54, %v583_v52 }
 0x2e0   :  { %v596_v57 = vadd.f32 %v595_v55, %v585_v56 }
 0x2e2   :  { %v597_v58 = vmax.f32 %v596_v57, 0.0 }
 0x2e4   :  { %599 = vst.msk [vmem:[%s932_s9] sm:$0x1] %vm598_vm4, %v597_v58 }

</bundles_post_ra>
